<compile_context>
chip_gen: v5e
topology: v5e:2x2
jax: 0.10.0
libtpu: 0.0.40
codegen_flags: <defaults>
</compile_context>

<pallas_src>
import functools

import jax
import jax.numpy as jnp
import numpy as np
from jax.experimental import pallas as pl
from jax.experimental.pallas import tpu as pltpu


# ----------------------------------------------------------------------------
# Kernel
# ----------------------------------------------------------------------------
def _basic_block_kernel(x_ref, w1a_ref, w1m_ref, w1c_ref, w2_ref,
                        b1_ref, b2s_ref, o_ref, *, H):
    """One grid step processes M = nb*H flattened rows.

    x_ref  : (M, W*Cin)          input, (W, Cin) flattened on lanes, f32
    w1a_ref: (W*Cin, W*Cout)     conv1 banded tap kh=0 (row h-1), BN1-scaled, bf16
    w1m_ref: (W*Cin, 2*W*Cout)   [conv1 kh=1 tap | shortcut 1x1], scales folded, bf16
    w1c_ref: (W*Cin, W*Cout)     conv1 banded tap kh=2 (row h+1), BN1-scaled, bf16
    w2_ref : (3*W*Cout, W*Cout)  conv2, three kh taps stacked along K, BN2-scaled, bf16
    b1_ref : (1, W*Cout)         BN1 bias (tiled over W), f32
    b2s_ref: (1, W*Cout)         BN2 bias + shortcut BN bias merged, f32
    o_ref  : (M, W*Cout)         output (lane-dense: W*Cout == 128 here), f32
    """
    M, WCin = x_ref.shape
    WCout = o_ref.shape[-1]

    x = x_ref[...]                                           # (M, WCin) f32

    # Row-within-image index; masks the +/-1 sublane rolls at image borders
    # (the W halo already lives in the banded weights as zero blocks).
    h_in = jax.lax.broadcasted_iota(jnp.int32, (M, WCin), 0) % H
    x_m1 = jnp.where(h_in == 0, 0.0, pltpu.roll(x, 1, axis=0))        # x[h-1]
    x_p1 = jnp.where(h_in == H - 1, 0.0, pltpu.roll(x, M - 1, axis=0))  # x[h+1]

    xb = x.astype(jnp.bfloat16)
    xm1b = x_m1.astype(jnp.bfloat16)
    xp1b = x_p1.astype(jnp.bfloat16)

    # conv1 centre tap fused with the shortcut 1x1 on the output axis
    # (one 256-wide MXU tile on v6e/v7x); BN scales are already in the weights.
    r_mid = jnp.dot(xb, w1m_ref[...], preferred_element_type=jnp.float32)
    acc1 = (r_mid[:, :WCout]
            + jnp.dot(xm1b, w1a_ref[...], preferred_element_type=jnp.float32)
            + jnp.dot(xp1b, w1c_ref[...], preferred_element_type=jnp.float32))
    sc = r_mid[:, WCout:]                                    # shortcut branch, f32

    out1 = jnp.maximum(acc1 + b1_ref[...], 0.0)              # BN1 bias + ReLU, f32

    # conv2: three kh taps stacked along K -> a single (M, 3*WCout) operand
    # built from two sublane rolls (128-lane-aligned concat), one bf16 cast.
    h_out = jax.lax.broadcasted_iota(jnp.int32, (M, WCout), 0) % H
    h_m1 = jnp.where(h_out == 0, 0.0, pltpu.roll(out1, 1, axis=0))
    h_p1 = jnp.where(h_out == H - 1, 0.0, pltpu.roll(out1, M - 1, axis=0))
    hcat = jnp.concatenate([h_m1, out1, h_p1], axis=-1).astype(jnp.bfloat16)

    acc2 = jnp.dot(hcat, w2_ref[...], preferred_element_type=jnp.float32)

    # residual add + merged (BN2 + shortcut-BN) bias + final ReLU; lane-dense store
    o_ref[...] = jnp.maximum(acc2 + sc + b2s_ref[...], 0.0)


# ----------------------------------------------------------------------------
# Trace-time weight / BN preparation
# ----------------------------------------------------------------------------
def _fold_bn(gamma, beta, running_mean, running_var, eps=1e-5):
    scale = gamma / jnp.sqrt(running_var + eps)
    return scale, beta - running_mean * scale


def _band_conv_weights(w_hwio, W):
    """(3, 3, Cin, Cout) HWIO -> (3, W*Cin, W*Cout).

    Folds the three kw taps and the W-axis zero padding of a 3x3 / pad-1 /
    stride-1 conv into a banded (block-Toeplitz) matrix per kh tap, so each kh
    tap is a single lane-dense matmul over the flattened (W*Cin) row.
    """
    KH, KW, Cin, Cout = w_hwio.shape
    out = jnp.zeros((KH, W * Cin, W * Cout), jnp.float32)
    for j in range(KW):
        # sel[wi, wo] = 1  iff  wi == wo + (j - 1); off-band == zero padding.
        sel = jnp.eye(W, W, k=1 - j, dtype=jnp.float32)
        contrib = jnp.einsum("io,kcd->kicod", sel,
                             w_hwio[:, j].astype(jnp.float32))
        out = out + contrib.reshape(KH, W * Cin, W * Cout)
    return out


def _block_diag_1x1(w_io, W):
    """(Cin, Cout) -> (W*Cin, W*Cout): 1x1 conv as one block-diagonal matmul."""
    eye = jnp.eye(W, dtype=jnp.float32)
    Cin, Cout = w_io.shape
    return jnp.einsum("io,cd->icod", eye, w_io.astype(jnp.float32)).reshape(
        W * Cin, W * Cout)


# ----------------------------------------------------------------------------
# Public wrapper (NCHW in / NCHW out, PyTorch convention)
# ----------------------------------------------------------------------------
def basic_block_forward(x_nchw, params, *, nb=None):
    w1, w2, ws = params["w1"], params["w2"], params["ws"]
    assert w1.shape[:2] == (3, 3) and w2.shape[:2] == (3, 3), \
        "only the kernel=3 / stride=1 / pad=1 config is implemented"
    s1, b1 = _fold_bn(*params["bn1"])
    s2, b2 = _fold_bn(*params["bn2"])
    ss, bs = _fold_bn(*params["bns"])

    x = jnp.transpose(x_nchw, (0, 2, 3, 1)).astype(jnp.float32)   # NCHW -> NHWC
    N, H, W, Cin = x.shape
    Cout = w1.shape[-1]
    WCin, WCout = W * Cin, W * Cout
    assert WCout % 128 == 0, "need lane-dense (W*Cout) outputs / aligned K concat"

    x_flat = x.reshape(N * H, WCin)                # lanes = W*Cin (free reshape)

    # Folded BN scale / bias tiled over W so they act on the flattened lane axis.
    tile = lambda v: jnp.tile(v.astype(jnp.float32), (W,)).reshape(1, WCout)
    s1t, b1t = tile(s1), tile(b1)
    s2t, b2t = tile(s2), tile(b2)
    sst, bst = tile(ss), tile(bs)

    # Banded / block-diagonal weights with BN scales folded in f32, then bf16.
    w1b = _band_conv_weights(w1, W) * s1t                     # (3, WCin, WCout)
    w2b = _band_conv_weights(w2, W) * s2t                     # (3, WCout, WCout)
    wsb = _block_diag_1x1(ws.reshape(Cin, Cout), W) * sst     # (WCin, WCout)

    w1a = w1b[0].astype(jnp.bfloat16)                              # kh=0 tap
    w1c = w1b[2].astype(jnp.bfloat16)                              # kh=2 tap
    w1m = jnp.concatenate([w1b[1], wsb], axis=1).astype(jnp.bfloat16)   # (WCin, 2*WCout)
    w2cat = jnp.concatenate([w2b[0], w2b[1], w2b[2]], axis=0).astype(
        jnp.bfloat16)                                              # (3*WCout, WCout)
    b2st = b2t + bst                                               # merged biases

    if nb is None:
        # Target >= ~512 rows per step (amortize per-step overhead), but keep
        # grid >= 2 when the batch allows it (v7x megacore has 2 TensorCores).
        nb = max(1, min(N, max(1, 512 // H)))
        while N % nb:
            nb -= 1
        if N // nb < 2 and N > 1:
            nb = max(1, nb // 2)
            while N % nb:
                nb -= 1
    assert N % nb == 0, "batch must be divisible by the per-step batch tile"
    Mb = nb * H
    assert Mb % 8 == 0, "per-step row tile must be sublane-aligned"

    const = lambda shape: pl.BlockSpec(shape, lambda n: (0,) * len(shape))

    out_flat = pl.pallas_call(
        functools.partial(_basic_block_kernel, H=H),
        out_shape=jax.ShapeDtypeStruct((N * H, WCout), jnp.float32),
        grid_spec=pltpu.PrefetchScalarGridSpec(
            num_scalar_prefetch=0,
            grid=(N // nb,),
            in_specs=[
                pl.BlockSpec((Mb, WCin), lambda n: (n, 0)),   # x rows
                const((WCin, WCout)),                         # w1 tap kh=0
                const((WCin, 2 * WCout)),                     # w1 kh=1 | shortcut
                const((WCin, WCout)),                         # w1 tap kh=2
                const((3 * WCout, WCout)),                    # w2 (K-stacked taps)
                const((1, WCout)),                            # b1
                const((1, WCout)),                            # b2 + bs
            ],
            out_specs=pl.BlockSpec((Mb, WCout), lambda n: (n, 0)),
        ),
        compiler_params=pltpu.CompilerParams(
            dimension_semantics=("parallel",)),
    )(x_flat, w1a, w1m, w1c, w2cat, b1t, b2st)

    out = out_flat.reshape(N, H, W, Cout)
    return jnp.transpose(out, (0, 3, 1, 2))                   # NHWC -> NCHW


# ----------------------------------------------------------------------------
# Parameters & pure-JAX reference
# ----------------------------------------------------------------------------
def make_params(key, in_planes, planes):
    """Deterministic synthetic parameters (matches module __init__ shapes)."""
    ks = jax.random.split(key, 8)
    w1 = 0.1 * jax.random.normal(ks[0], (3, 3, in_planes, planes), jnp.float32)
    w2 = 0.1 * jax.random.normal(ks[1], (3, 3, planes, planes), jnp.float32)
    ws = 0.1 * jax.random.normal(ks[2], (1, 1, in_planes, planes), jnp.float32)
    g1 = 1.0 + 0.1 * jax.random.normal(ks[3], (planes,), jnp.float32)
    be1 = 0.1 * jax.random.normal(ks[4], (planes,), jnp.float32)
    g2 = 1.0 + 0.1 * jax.random.normal(ks[5], (planes,), jnp.float32)
    be2 = 0.1 * jax.random.normal(ks[6], (planes,), jnp.float32)
    gs = jnp.ones((planes,), jnp.float32)
    bes = 0.1 * jax.random.normal(ks[7], (planes,), jnp.float32)
    zeros = jnp.zeros((planes,), jnp.float32)
    ones = jnp.ones((planes,), jnp.float32)
    return dict(w1=w1, w2=w2, ws=ws,
                bn1=(g1, be1, zeros, ones),
                bn2=(g2, be2, zeros, ones),
                bns=(gs, bes, zeros, ones))


def reference_forward(x_nchw, params):
    """Pure-JAX f32 reference (lax.conv) mirroring the PyTorch forward."""
    w1, w2, ws = params["w1"], params["w2"], params["ws"]
    s1, b1 = _fold_bn(*params["bn1"])
    s2, b2 = _fold_bn(*params["bn2"])
    ss, bs = _fold_bn(*params["bns"])
    bc = lambda v: v.reshape(1, 1, 1, -1)

    x = jnp.transpose(x_nchw, (0, 2, 3, 1)).astype(jnp.float32)

    def conv(v, w, pad):
        return jax.lax.conv_general_dilated(
            v, w, window_strides=(1, 1), padding=[(pad, pad), (pad, pad)],
            dimension_numbers=("NHWC", "HWIO", "NHWC"))

    out = conv(x, w1, 1) * bc(s1) + bc(b1)
    out = jax.nn.relu(out)
    out = conv(out, w2, 1) * bc(s2) + bc(b2)
    sc = conv(x, ws, 0) * bc(ss) + bc(bs)
    out = jax.nn.relu(out + sc)
    return jnp.transpose(out, (0, 3, 1, 2))


if __name__ == "__main__":
    key = jax.random.PRNGKey(0)
    kx, kp = jax.random.split(key)

    N, in_planes, planes, H, W = 2, 4, 8, 16, 16
    x = jax.random.normal(kx, (N, in_planes, H, W), jnp.float32)
    params = make_params(kp, in_planes, planes)

    out = jax.block_until_ready(basic_block_forward(x, params))
    ref = jax.block_until_ready(reference_forward(x, params))

    # bf16 matmul operands (f32 accumulation) -> looser tolerance than pure f32.
    np.testing.assert_allclose(np.asarray(out), np.asarray(ref),
                               rtol=5e-2, atol=5e-2)
    print("KERNEL_OK")
</pallas_src>

<mosaic_0001>
module attributes {stable_mosaic.version = 11 : i64} {
  func.func @_basic_block_kernel(%arg0: i32, %arg1: memref<16x64xf32, #tpu.memory_space<vmem>>, %arg2: memref<64x128xbf16, #tpu.memory_space<vmem>>, %arg3: memref<64x256xbf16, #tpu.memory_space<vmem>>, %arg4: memref<64x128xbf16, #tpu.memory_space<vmem>>, %arg5: memref<384x128xbf16, #tpu.memory_space<vmem>>, %arg6: memref<1x128xf32, #tpu.memory_space<vmem>>, %arg7: memref<1x128xf32, #tpu.memory_space<vmem>>, %arg8: memref<16x128xf32, #tpu.memory_space<vmem>>) attributes {dimension_semantics = [#tpu.dimension_semantics<parallel>], iteration_bounds = array<i64: 2>, scalar_prefetch = 0 : i64, scratch_operands = 0 : i64, tpu.core_type = #tpu.core_type<tc>, window_params = [{transform_indices = @transform_0, window_bounds = array<i64: 16, 64>}, {pipeline_mode = #tpu.pipeline_mode<synchronous>, transform_indices = @transform_1, window_bounds = array<i64: 64, 128>}, {pipeline_mode = #tpu.pipeline_mode<synchronous>, transform_indices = @transform_2, window_bounds = array<i64: 64, 256>}, {pipeline_mode = #tpu.pipeline_mode<synchronous>, transform_indices = @transform_3, window_bounds = array<i64: 64, 128>}, {pipeline_mode = #tpu.pipeline_mode<synchronous>, transform_indices = @transform_4, window_bounds = array<i64: 384, 128>}, {pipeline_mode = #tpu.pipeline_mode<synchronous>, transform_indices = @transform_5, window_bounds = array<i64: 1, 128>}, {pipeline_mode = #tpu.pipeline_mode<synchronous>, transform_indices = @transform_6, window_bounds = array<i64: 1, 128>}, {transform_indices = @transform_7, window_bounds = array<i64: 16, 128>}]} {
    %c0 = arith.constant 0 : index
    %c0_0 = arith.constant 0 : index
    %0 = vector.load %arg1[%c0, %c0_0] : memref<16x64xf32, #tpu.memory_space<vmem>>, vector<16x64xf32>
    %1 = tpu.iota {dimensions = array<i32: 0>} : vector<16x64xi32>
    %c16_i32 = arith.constant 16 : i32
    %c0_i32 = arith.constant 0 : i32
    %2 = arith.cmpi eq, %c16_i32, %c0_i32 : i32
    %c1_i32 = arith.constant 1 : i32
    %3 = arith.select %2, %c1_i32, %c16_i32 : i32
    %4 = vector.broadcast %3 : i32 to vector<16x64xi32>
    %5 = arith.remsi %1, %4 : vector<16x64xi32>
    %c0_i32_1 = arith.constant 0 : i32
    %6 = vector.broadcast %c0_i32_1 : i32 to vector<16x64xi32>
    %7 = arith.cmpi ne, %5, %6 : vector<16x64xi32>
    %c0_i32_2 = arith.constant 0 : i32
    %8 = vector.broadcast %c0_i32_2 : i32 to vector<16x64xi32>
    %9 = arith.cmpi slt, %5, %8 : vector<16x64xi32>
    %c0_i32_3 = arith.constant 0 : i32
    %10 = arith.cmpi slt, %3, %c0_i32_3 : i32
    %11 = vector.broadcast %10 : i1 to vector<16x64xi1>
    %12 = vector.broadcast %11 : vector<16x64xi1> to vector<16x64xi1>
    %13 = arith.xori %9, %12 : vector<16x64xi1>
    %14 = arith.andi %13, %7 : vector<16x64xi1>
    %15 = vector.broadcast %3 : i32 to vector<16x64xi32>
    %16 = arith.addi %5, %15 : vector<16x64xi32>
    %17 = arith.select %14, %16, %5 : vector<16x64xi1>, vector<16x64xi32>
    %c0_i32_4 = arith.constant 0 : i32
    %18 = vector.broadcast %c0_i32_4 : i32 to vector<16x64xi32>
    %19 = arith.cmpi eq, %17, %18 : vector<16x64xi32>
    %c1_i32_5 = arith.constant 1 : i32
    %20 = tpu.dynamic_rotate %0 by %c1_i32_5 dim 0 : vector<16x64xf32>, i32 -> vector<16x64xf32>
    %cst = arith.constant 0.000000e+00 : f32
    %21 = vector.broadcast %cst : f32 to vector<16x64xf32>
    %22 = arith.select %19, %21, %20 : vector<16x64xi1>, vector<16x64xf32>
    %c15_i32 = arith.constant 15 : i32
    %23 = vector.broadcast %c15_i32 : i32 to vector<16x64xi32>
    %24 = arith.cmpi eq, %17, %23 : vector<16x64xi32>
    %c15_i32_6 = arith.constant 15 : i32
    %25 = tpu.dynamic_rotate %0 by %c15_i32_6 dim 0 : vector<16x64xf32>, i32 -> vector<16x64xf32>
    %cst_7 = arith.constant 0.000000e+00 : f32
    %26 = vector.broadcast %cst_7 : f32 to vector<16x64xf32>
    %27 = arith.select %24, %26, %25 : vector<16x64xi1>, vector<16x64xf32>
    %28 = arith.truncf %0 : vector<16x64xf32> to vector<16x64xbf16>
    %29 = arith.truncf %22 : vector<16x64xf32> to vector<16x64xbf16>
    %30 = arith.truncf %27 : vector<16x64xf32> to vector<16x64xbf16>
    %c0_8 = arith.constant 0 : index
    %c0_9 = arith.constant 0 : index
    %31 = vector.load %arg3[%c0_8, %c0_9] : memref<64x256xbf16, #tpu.memory_space<vmem>>, vector<64x256xbf16>
    %cst_10 = arith.constant dense<0.000000e+00> : vector<16x256xf32>
    %32 = tpu.matmul %28, %31, %cst_10 {dimension_numbers = #tpu.dot_dimension_numbers<[1], [0], [0], [1], [0, 0, 1, 1], [], []>} : vector<16x64xbf16>, vector<64x256xbf16>, vector<16x256xf32> -> vector<16x256xf32>
    %33 = vector.extract_strided_slice %32 {offsets = [0, 0], sizes = [16, 128], strides = [1, 1]} : vector<16x256xf32> to vector<16x128xf32>
    %c0_11 = arith.constant 0 : index
    %c0_12 = arith.constant 0 : index
    %34 = vector.load %arg2[%c0_11, %c0_12] : memref<64x128xbf16, #tpu.memory_space<vmem>>, vector<64x128xbf16>
    %cst_13 = arith.constant dense<0.000000e+00> : vector<16x128xf32>
    %35 = tpu.matmul %29, %34, %cst_13 {dimension_numbers = #tpu.dot_dimension_numbers<[1], [0], [0], [1], [0, 0, 1, 1], [], []>} : vector<16x64xbf16>, vector<64x128xbf16>, vector<16x128xf32> -> vector<16x128xf32>
    %36 = arith.addf %33, %35 : vector<16x128xf32>
    %c0_14 = arith.constant 0 : index
    %c0_15 = arith.constant 0 : index
    %37 = vector.load %arg4[%c0_14, %c0_15] : memref<64x128xbf16, #tpu.memory_space<vmem>>, vector<64x128xbf16>
    %cst_16 = arith.constant dense<0.000000e+00> : vector<16x128xf32>
    %38 = tpu.matmul %30, %37, %cst_16 {dimension_numbers = #tpu.dot_dimension_numbers<[1], [0], [0], [1], [0, 0, 1, 1], [], []>} : vector<16x64xbf16>, vector<64x128xbf16>, vector<16x128xf32> -> vector<16x128xf32>
    %39 = arith.addf %36, %38 : vector<16x128xf32>
    %40 = vector.extract_strided_slice %32 {offsets = [0, 128], sizes = [16, 128], strides = [1, 1]} : vector<16x256xf32> to vector<16x128xf32>
    %c0_17 = arith.constant 0 : index
    %c0_18 = arith.constant 0 : index
    %41 = vector.load %arg6[%c0_17, %c0_18] : memref<1x128xf32, #tpu.memory_space<vmem>>, vector<1x128xf32>
    %42 = vector.broadcast %41 : vector<1x128xf32> to vector<16x128xf32>
    %43 = arith.addf %39, %42 : vector<16x128xf32>
    %cst_19 = arith.constant 0.000000e+00 : f32
    %44 = vector.broadcast %cst_19 : f32 to vector<16x128xf32>
    %45 = arith.maximumf %43, %44 : vector<16x128xf32>
    %46 = tpu.iota {dimensions = array<i32: 0>} : vector<16x128xi32>
    %c16_i32_20 = arith.constant 16 : i32
    %c0_i32_21 = arith.constant 0 : i32
    %47 = arith.cmpi eq, %c16_i32_20, %c0_i32_21 : i32
    %c1_i32_22 = arith.constant 1 : i32
    %48 = arith.select %47, %c1_i32_22, %c16_i32_20 : i32
    %49 = vector.broadcast %48 : i32 to vector<16x128xi32>
    %50 = arith.remsi %46, %49 : vector<16x128xi32>
    %c0_i32_23 = arith.constant 0 : i32
    %51 = vector.broadcast %c0_i32_23 : i32 to vector<16x128xi32>
    %52 = arith.cmpi ne, %50, %51 : vector<16x128xi32>
    %c0_i32_24 = arith.constant 0 : i32
    %53 = vector.broadcast %c0_i32_24 : i32 to vector<16x128xi32>
    %54 = arith.cmpi slt, %50, %53 : vector<16x128xi32>
    %c0_i32_25 = arith.constant 0 : i32
    %55 = arith.cmpi slt, %48, %c0_i32_25 : i32
    %56 = vector.broadcast %55 : i1 to vector<16x128xi1>
    %57 = vector.broadcast %56 : vector<16x128xi1> to vector<16x128xi1>
    %58 = arith.xori %54, %57 : vector<16x128xi1>
    %59 = arith.andi %58, %52 : vector<16x128xi1>
    %60 = vector.broadcast %48 : i32 to vector<16x128xi32>
    %61 = arith.addi %50, %60 : vector<16x128xi32>
    %62 = arith.select %59, %61, %50 : vector<16x128xi1>, vector<16x128xi32>
    %c0_i32_26 = arith.constant 0 : i32
    %63 = vector.broadcast %c0_i32_26 : i32 to vector<16x128xi32>
    %64 = arith.cmpi eq, %62, %63 : vector<16x128xi32>
    %c1_i32_27 = arith.constant 1 : i32
    %65 = tpu.dynamic_rotate %45 by %c1_i32_27 dim 0 : vector<16x128xf32>, i32 -> vector<16x128xf32>
    %cst_28 = arith.constant 0.000000e+00 : f32
    %66 = vector.broadcast %cst_28 : f32 to vector<16x128xf32>
    %67 = arith.select %64, %66, %65 : vector<16x128xi1>, vector<16x128xf32>
    %c15_i32_29 = arith.constant 15 : i32
    %68 = vector.broadcast %c15_i32_29 : i32 to vector<16x128xi32>
    %69 = arith.cmpi eq, %62, %68 : vector<16x128xi32>
    %c15_i32_30 = arith.constant 15 : i32
    %70 = tpu.dynamic_rotate %45 by %c15_i32_30 dim 0 : vector<16x128xf32>, i32 -> vector<16x128xf32>
    %cst_31 = arith.constant 0.000000e+00 : f32
    %71 = vector.broadcast %cst_31 : f32 to vector<16x128xf32>
    %72 = arith.select %69, %71, %70 : vector<16x128xi1>, vector<16x128xf32>
    %73 = tpu.concatenate %67, %45, %72 in 1 : vector<16x128xf32>, vector<16x128xf32>, vector<16x128xf32> -> vector<16x384xf32>
    %74 = arith.truncf %73 : vector<16x384xf32> to vector<16x384xbf16>
    %c0_32 = arith.constant 0 : index
    %c0_33 = arith.constant 0 : index
    %75 = vector.load %arg5[%c0_32, %c0_33] : memref<384x128xbf16, #tpu.memory_space<vmem>>, vector<384x128xbf16>
    %cst_34 = arith.constant dense<0.000000e+00> : vector<16x128xf32>
    %76 = tpu.matmul %74, %75, %cst_34 {dimension_numbers = #tpu.dot_dimension_numbers<[1], [0], [0], [1], [0, 0, 1, 1], [], []>} : vector<16x384xbf16>, vector<384x128xbf16>, vector<16x128xf32> -> vector<16x128xf32>
    %77 = arith.addf %76, %40 : vector<16x128xf32>
    %c0_35 = arith.constant 0 : index
    %c0_36 = arith.constant 0 : index
    %78 = vector.load %arg7[%c0_35, %c0_36] : memref<1x128xf32, #tpu.memory_space<vmem>>, vector<1x128xf32>
    %79 = vector.broadcast %78 : vector<1x128xf32> to vector<16x128xf32>
    %80 = arith.addf %77, %79 : vector<16x128xf32>
    %cst_37 = arith.constant 0.000000e+00 : f32
    %81 = vector.broadcast %cst_37 : f32 to vector<16x128xf32>
    %82 = arith.maximumf %80, %81 : vector<16x128xf32>
    %c0_38 = arith.constant 0 : index
    %c0_39 = arith.constant 0 : index
    %83 = vector.load %arg8[%c0_38, %c0_39] : memref<16x128xf32, #tpu.memory_space<vmem>>, vector<16x128xf32>
    tpu.vector_store %arg8[%c0_38, %c0_39], %82 {strides = array<i32>} : memref<16x128xf32, #tpu.memory_space<vmem>>, vector<16x128xf32>,
    return
  }
  func.func @transform_0(%arg0: i32) -> (i32, i32) {
    %c0_i32 = arith.constant 0 : i32
    %c0_i32_0 = arith.constant 0 : i32
    return %arg0, %c0_i32 : i32, i32
  }
  func.func @transform_1(%arg0: i32) -> (i32, i32) {
    %c0_i32 = arith.constant 0 : i32
    %c0_i32_0 = arith.constant 0 : i32
    %c0_i32_1 = arith.constant 0 : i32
    return %c0_i32, %c0_i32_0 : i32, i32
  }
  func.func @transform_2(%arg0: i32) -> (i32, i32) {
    %c0_i32 = arith.constant 0 : i32
    %c0_i32_0 = arith.constant 0 : i32
    %c0_i32_1 = arith.constant 0 : i32
    return %c0_i32, %c0_i32_0 : i32, i32
  }
  func.func @transform_3(%arg0: i32) -> (i32, i32) {
    %c0_i32 = arith.constant 0 : i32
    %c0_i32_0 = arith.constant 0 : i32
    %c0_i32_1 = arith.constant 0 : i32
    return %c0_i32, %c0_i32_0 : i32, i32
  }
  func.func @transform_4(%arg0: i32) -> (i32, i32) {
    %c0_i32 = arith.constant 0 : i32
    %c0_i32_0 = arith.constant 0 : i32
    %c0_i32_1 = arith.constant 0 : i32
    return %c0_i32, %c0_i32_0 : i32, i32
  }
  func.func @transform_5(%arg0: i32) -> (i32, i32) {
    %c0_i32 = arith.constant 0 : i32
    %c0_i32_0 = arith.constant 0 : i32
    %c0_i32_1 = arith.constant 0 : i32
    return %c0_i32, %c0_i32_0 : i32, i32
  }
  func.func @transform_6(%arg0: i32) -> (i32, i32) {
    %c0_i32 = arith.constant 0 : i32
    %c0_i32_0 = arith.constant 0 : i32
    %c0_i32_1 = arith.constant 0 : i32
    return %c0_i32, %c0_i32_0 : i32, i32
  }
  func.func @transform_7(%arg0: i32) -> (i32, i32) {
    %c0_i32 = arith.constant 0 : i32
    %c0_i32_0 = arith.constant 0 : i32
    return %arg0, %c0_i32 : i32, i32
  }
}

</mosaic_0001>

<bundles_post_ra>
// kernel: tpu_custom_call.1
= control target key start
LH: loop header
LB: loop body
LE: loop exit
PB: predicated region body
PF: predicated region fallthrough
CT: control target
= control target key end

     0   :  { %s1824_s0 = inlined_call_operand.hbm [shape: f32[32,64], index: 0, kind: input, shape index: {}]   ;;  %s1825_s1 = inlined_call_operand.hbm [shape: bf16[64,128], index: 1, kind: input, shape index: {}]   ;;  %s1826_s2 = inlined_call_operand.hbm [shape: bf16[64,256], index: 2, kind: input, shape index: {}]   ;;  %s1827_s3 = inlined_call_operand.hbm [shape: bf16[64,128], index: 3, kind: input, shape index: {}]   ;;  %s1828_s4 = inlined_call_operand.hbm [shape: bf16[384,128], index: 4, kind: input, shape index: {}]   ;;  %s1829_s5 = inlined_call_operand.vmem [shape: f32[1,128], index: 5, kind: input, shape index: {}]   ;;  %s1830_s6 = inlined_call_operand.vmem [shape: f32[1,128], index: 6, kind: input, shape index: {}]   ;;  %s1831_s7 = inlined_call_operand.hbm [shape: f32[32,128], index: 7, kind: output, shape index: {}]  }
   0x1   :  { %1834 = sst [smem:[#allocation16_spill]] %s1825_s1 }
   0x2   :  { %12 = vsyncpa [#allocation3], 0 }
   0x3   :  { %14 = vsyncpa [#allocation3 + $0x1], 0 }
   0x4   :  { %15 = vsyncpa [#allocation6], 0 }
   0x5   :  { %16 = vsyncpa [#allocation9], 0 }
   0x6   :  { %17 = vsyncpa [#allocation4], 0 }
   0x7   :  { %19 = vsyncpa [#allocation4 + $0x1], 0  ;;  %s1603_s24 = smov 0   ;;  %s1605_s25 = smov 0  }
   0x8   :  { %s1607_s26 = smov 0   ;;  %s1609_s27 = smov 0  }
   0x9 LB: > { %s1624_s28 = sadd.s32 4294967295, %s1550_s27   ;;  %s994_s29 = sadd.s32 4294967294, %s1550_s27   ;;  %s1550_s27 = sphi %s1609_s27, %s1852_s27   ;;  %s1546_s26 = sphi %s1607_s26, %s1851_s26   ;;  %s1542_s25 = sphi %s1605_s25, %s1850_s25   ;;  %s1538_s24 = sphi %s1603_s24, %s1849_s24  }
   0xa   : > { %p45_p0 = scmp.ne.s32.totalorder %s1542_s25, %s1538_s24  ;;  %p46_p1 = scmp.eq.s32.totalorder %s1624_s28, 0 }
   0xb   : > { %p195_p2 = scmp.eq.s32.totalorder %s1624_s28, 1  ;;  %p201_p3 = scmp.eq.s32.totalorder %s994_s29, 1 }
   0xc   : > { %p1633_p4 = por %p46_p1, %p45_p0  ;;  %p995_p5 = scmp.ge.s32.totalorder %s1550_s27, 1 }
   0xd   : > { %p1638_p6 = por %p201_p3, %p45_p0  ;;  %p208_p7 = scmp.lt.s32.totalorder %s1550_s27, 3 }
   0xe   : > { %s1837_s1 = sld [smem:[#allocation16_spill]]  ;;  %s1552_s13 = smov [#allocation5]  }
   0xf   : > { %p1646_p8 = pnand %p995_p5, %p208_p7  ;;  %s221_s14 = sshll.u32 %s1552_s13, 4  ;;  %s222_s14 = int_to_ptr.vmem [resolvable:$true] %s221_s14 }
  0x10   : > { %s247_s18 = sshll.u32 %s1827_s3, 4  ;;  %s1553_s19 = smov 64   ;;  %s248_s18 = int_to_ptr.hbm [resolvable:$true] %s247_s18 }
  0x11   : > { %p1250_p9 = pneg %p1646_p8  ;;  %s1554_s20 = smov 4  }
  0x12   : > { %s1555_s21 = smov [#allocation8]   ;;  %s233_s9 = sshll.u32 %s1826_s2, 4  ;;  %s234_s9 = int_to_ptr.hbm [resolvable:$true] %s233_s9 }
  0x13   : > { %p1654_p10 = pnand %p1250_p9, %p46_p1  ;;  %s249_s22 = sshll.u32 %s1555_s21, 4  ;;  %s250_s22 = int_to_ptr.vmem [resolvable:$true] %s249_s22 }
  0x14   : > { %s219_s11 = sshll.u32 %s1837_s1, 4  ;;  %s1556_s10 = smov [#allocation7]   ;;  %s220_s11 = int_to_ptr.hbm [resolvable:$true] %s219_s11 }
  0x15   : > { %1253 = dma.hbm_to_vmem [thread:$0]  (!%p1654_p10), %s220_s11, 512, %s222_s14, [#allocation6], %s1553_s19, %s1553_s19, %s1554_s20  }
  0x16   : > { %1259 = dma.hbm_to_vmem [thread:$0]  (!%p1654_p10), %s248_s18, 512, %s250_s22, [#allocation9], %s1553_s19, %s1553_s19, %s1554_s20  }
  0x17   : > { %s235_s13 = sshll.u32 %s1556_s10, 4  ;;  %s261_s16 = sshll.u32 %s1828_s4, 4  ;;  %s236_s13 = int_to_ptr.vmem [resolvable:$true] %s235_s13  ;;  %s262_s16 = int_to_ptr.hbm [resolvable:$true] %s261_s16 }
  0x18   : > { %s1832_s17 = smov 128   ;;  %s1833_s21 = smov 8  }
  0x19   : > { %1256 = dma.hbm_to_vmem [thread:$0]  (!%p1654_p10), %s234_s9, 1024, %s236_s13, [#allocation6], %s1832_s17, %s1832_s17, %s1833_s21  }
  0x1a   : > { %s1559_s18 = smov [#allocation10]   ;;  %s1680_s23 = sadd.s32 1, %s1550_s27  }
  0x1b   : > { %s263_s22 = sshll.u32 %s1559_s18, 4  ;;  %s32_s29 = sadd.s32 1, %s1546_s26  ;;  %s264_s22 = int_to_ptr.vmem [resolvable:$true] %s263_s22 }
  0x1c   : > { %1262 = dma.hbm_to_vmem [thread:$0]  (!%p1654_p10), %s262_s16, 3072, %s264_s22, [#allocation9], %s1553_s19, %s1553_s19, %s1554_s20  }
  0x1d   : > { %s29_s10 = ssub.s32 %s1550_s27, %s1680_s23  ;;  %p39_p12 = scmp.ne.s32.totalorder %s1546_s26, %s1542_s25 }
  0x1e   : > { %p30_p13 = scmp.eq.s32.totalorder %s29_s10, 0  ;;  %p40_p0 = scmp.eq.s32.totalorder %s1550_s27, 0 }
  0x1f   : > { %p1690_p3 = por %p195_p2, %p39_p12  ;;  %p1275_p5 = scmp.lt.s32.totalorder %s1550_s27, 2 }
  0x20   : > { %s1696_s9 = scalar_select %p30_p13, %s1546_s26, %s32_s29  }
  0x21   : > { %p41_p7 = por %p40_p0, %p39_p12  ;;  %s283_s13 = sand.u32 1, %s1546_s26  }
  0x22   : > { %s1001_s15 = sshll.u32 %s283_s13, 4  ;;  %s1188_s19 = sshll.u32 %s1550_s27, 4 }
  0x23   : > { %s292_s16 = scalar_lea.hbm %s1824_s0, %s1188_s19  ;;  %s287_s18 = scalar_lea.vmem [#allocation2], %s1001_s15 }
  0x24   : > { %s295_s22 = sshll.u32 %s287_s18, 4  ;;  %s293_s10 = sshll.u32 %s292_s16, 4  ;;  %s296_s22 = int_to_ptr.vmem [resolvable:$true] %s295_s22  ;;  %s294_s10 = int_to_ptr.hbm [resolvable:$true] %s293_s10 }
  0x25   : > { %p1703_p2 = pnand %p1275_p5, %p41_p7  ;;  %s284_s29 = scalar_lea.sflag [#allocation3], %s283_s13 }
  0x26   : > { %s1446_s21 = sshra.s32 %s294_s10, 4  ;;  %s1453_s20 = scalar_lea.hbm %s1824_s0, 32  ;;  %s1447_s21 = int_to_ptr.hbm [resolvable:$true] %s1446_s21 }
  0x27   : > { %s1448_s1 = scalar_lea.hbm %s1447_s21, 16  ;;  %p1450_p10 = pneg %p1703_p2 }
  0x28   : > { %p1449_p9 = scmp.ne.s32.totalorder %s1447_s21, %s1448_s1  ;;  %p1454_p0 = scmp.lt.s32.totalorder %s1447_s21, %s1824_s0 }
  0x29   : > { %p1455_p5 = scmp.lt.s32.totalorder %s1453_s20, %s1448_s1 }
  0x2a   : > { %p1451_p12 = pnand %p1450_p10, %p1449_p9 }
  0x2b   : > { %p1456_p7 = por %p1455_p5, %p1454_p0 }
  0x2c   : > { %p1452_p13 = pneg %p1451_p12 }
  0x2e   : > { %p1457_p11 = pnand %p1456_p7, %p1452_p13 }
  0x30   : > { %1460 = shalt.err (!%p1457_p11)
}
  0x31   : > { %s1842_s13 = smov 8   ;;  %s1843_s18 = smov 128  }
  0x32   : > { %1266 = dma.hbm_to_vmem [thread:$0]  (!%p1703_p2), %s294_s10, 256, %s296_s22, %s284_s29, %s1843_s18, %s1843_s18, %s1842_s13  }
  0x33   : > { %307 = sbr.rel (%p1646_p8) target bundleno = 396 (0x18c), region = 48  ;;  %s1723_s19 = sand.u32 (!%p1646_p8), 1, %s1542_s25  }
  0x34   : > { %s1005_s1 = sshll.u32 (!%p1646_p8), %s1723_s19, 4  ;;  %s310_s21 = scalar_lea.sflag (!%p1646_p8), [#allocation3], %s1723_s19 }
  0x35   : > { %s313_s15 = scalar_lea.vmem (!%p1646_p8), [#allocation2], %s1005_s1 }
  0x38   : > { %1521 = dma.done.wait (%p1633_p4), %s310_s21, 256  }
  0x39   : > { %1523 = vsyncadd (%p1633_p4), %s310_s21, 4294967040 }
  0x3a   : > { %1525 = dma.done.wait (%p46_p1), [#allocation6], 1536  }
  0x3b   : > { %1527 = vsyncadd (%p46_p1), [#allocation6], 4294965760 }
  0x3c   : > { %1529 = dma.done.wait (%p46_p1), [#allocation9], 3584  }
  0x3d   : > { %1531 = vsyncadd (%p46_p1), [#allocation9], 4294963712  ;;  %v370_v0 = vlaneseq  ;;  %v1037_v2 = vld [vmem:[#allocation7 + $0x30] sm:$0xf]  ;;  %v1196_v3 = vld [vmem:[#allocation7 + $0x34] sm:$0xf0] }
  0x3e   : > { %v1200_v4 = vld [vmem:[#allocation5 + $0x18] sm:$0xff]  ;;  %v1038_v5 = vor.u32 %v1196_v3, %v1037_v2  ;;  %v1029_v6 = vld [vmem:[#allocation7 + $0x20] sm:$0xf]  ;;  %v1194_v7 = vld [vmem:[#allocation7 + $0x24] sm:$0xf0]  ;;  %vm466_vm2 = vcmask 523264  }
  0x3f   : > { %v1741_v1 = vshrl.u32 %v370_v0, 7  ;;  %537 = vmatpush.bf16.msra.mxu2 %v1200_v4  ;;  %v1199_v8 = vld [vmem:[#allocation5 + $0x10] sm:$0xff]  ;;  %v1030_v9 = vor.u32 %v1194_v7, %v1029_v6  ;;  %v1192_v12 = vld [vmem:[#allocation7 + $0x14] sm:$0xf0]  ;;  %v1198_v17 = vld [vmem:[#allocation5 + $0x8] sm:$0xff]  ;;  %vm1560_vm7 = vmmov 1  }
  0x40   : > { %474 = vmatpush.bf16.msra.mxu3 %v1038_v5  ;;  %v1021_v10 = vld [vmem:[#allocation7 + $0x10] sm:$0xf]  ;;  %v369_v14 = vld [vmem:[%s313_s15 + $0x8] sm:$0xff]  ;;  %v1195_v18 = vld [vmem:[#allocation7 + $0x34] sm:$0xf]  ;;  %s1229_s10 = sshll.u32 %s1624_s28, 4 }
  0x41   : > { %v377_v11 = vand.u32 15, %v1741_v1  ;;  %v368_v13 = vld [vmem:[%s313_s15] sm:$0xff]  ;;  %vm401_vm0 = vcmp.lt.s32.totalorder %v1741_v1, 1  ;;  %v400_v16 = vrot.slane %v369_v14, 7  ;;  %v1039_v19 = vld [vmem:[#allocation7 + $0x38] sm:$0xf0]  ;;  %v1022_v20 = vor.u32 %v1192_v12, %v1021_v10  ;;  %s879_s14 = scalar_lea.hbm %s1831_s7, %s1229_s10 }
  0x42   : > { %v399_v15 = vrot.slane %v368_v13, 7  ;;  %v1193_v23 = vld [vmem:[#allocation7 + $0x24] sm:$0xf]  ;;  %v1031_v24 = vld [vmem:[#allocation7 + $0x28] sm:$0xf0]  ;;  %v1042_v27 = vor.u32 %v1195_v18, %v1039_v19  ;;  %v1204_v35 = vld [vmem:[#allocation8 + $0x18] sm:$0xff]  ;;  %v415_v37 = vpack.c.bf16 %v369_v14, %v368_v13 }
  0x43   : > { %538 = vmatpush.bf16.msra.mxu2 %v1199_v8  ;;  %vm1745_vm1 = vcmp.eq.s32.totalorder %v377_v11, 0  ;;  %v1013_v25 = vld [vmem:[#allocation7] sm:$0xf]  ;;  %v1190_v26 = vld [vmem:[#allocation7 + $0x4] sm:$0xf0]  ;;  %v1034_v31 = vor.u32 %v1193_v23, %v1031_v24  ;;  %v1203_v39 = vld [vmem:[#allocation8 + $0x10] sm:$0xff] }
  0x44   : > { %475 = vmatpush.bf16.msra.mxu3 %v1030_v9  ;;  %v403_v22 = vsel %vm401_vm0, %v400_v16, %v399_v15  ;;  %v1197_v28 = vld [vmem:[#allocation5] sm:$0xff]  ;;  %v402_v29 = vsel %vm401_vm0, %v399_v15, %v400_v16  ;;  %488 = vmatpush.bf16.msra.mxu1 %v1042_v27  ;;  %v1014_v32 = vor.u32 %v1190_v26, %v1013_v25  ;;  %v1191_v33 = vld [vmem:[#allocation7 + $0x14] sm:$0xf]  ;;  %v1023_v34 = vld [vmem:[#allocation7 + $0x18] sm:$0xf0]  ;;  %v372_v40 = vadd.s32 8, %v1741_v1 }
  0x45   : > { %v404_v30 = vsel %vm1745_vm1, 0.0, %v403_v22  ;;  %v1026_v38 = vor.u32 %v1191_v33, %v1023_v34  ;;  %v408_v41 = vrot.slane %v368_v13, 1  ;;  %v409_v42 = vrot.slane %v369_v14, 1  ;;  %v1202_v43 = vld [vmem:[#allocation8 + $0x8] sm:$0xff]  ;;  %v1201_v45 = vld [vmem:[#allocation8] sm:$0xff]  ;;  %v1220_v54 = vld [vmem:[#allocation10 + $0x78] sm:$0xff] }
  0x46   : > { %v416_v36 = vpack.c.bf16 %v402_v29, %v404_v30  ;;  %v384_v44 = vand.u32 15, %v372_v40  ;;  %vm410_vm3 = vcmp.lt.s32.totalorder %v1741_v1, 7  ;;  %v1189_v51 = vld [vmem:[#allocation7 + $0x4] sm:$0xf]  ;;  %v1015_v52 = vld [vmem:[#allocation7 + $0x8] sm:$0xf0]  ;;  %vm1175_vm5 = vmneg %vm1745_vm1 }
  0x47   : > { %539 = vmatpush.bf16.msra.mxu2 %v1198_v17  ;;  %v412_v47 = vsel %vm410_vm3, %v409_v42, %v408_v41  ;;  %v411_v48 = vsel %vm410_vm3, %v408_v41, %v409_v42  ;;  %v1018_v53 = vor.u32 %v1189_v51, %v1015_v52  ;;  %v1212_v55 = vld [vmem:[#allocation10 + $0x38] sm:$0xff]  ;;  %v1219_v57 = vld [vmem:[#allocation10 + $0x70] sm:$0xff]  ;;  %v1218_v60 = vld [vmem:[#allocation10 + $0x68] sm:$0xff]  ;;  %s364_s16 = scalar_lea.vmem [#allocation11], %s1005_s1  ;;  %s882_s18 = sshll.u32 %s879_s14, 4  ;;  %s883_s18 = int_to_ptr.hbm [resolvable:$true] %s882_s18 }
  0x48   : > { %476 = vmatpush.bf16.msra.mxu3 %v1022_v20  ;;  %489 = vmatpush.bf16.msra.mxu1 %v1034_v31  ;;  %vm1759_vm4 = vcmp.eq.s32.totalorder %v384_v44, 15  ;;  %v1228_v56 = vld [vmem:[#allocation10 + $0xb8] sm:$0xff]  ;;  %v1211_v58 = vld [vmem:[#allocation10 + $0x30] sm:$0xff]  ;;  %v1210_v61 = vld [vmem:[#allocation10 + $0x28] sm:$0xff]  ;;  %s880_s13 = sshll.u32 %s364_s16, 4  ;;  %s868_s28 = scalar_lea.sflag [#allocation4], %s1723_s19  ;;  %s881_s13 = int_to_ptr.vmem [resolvable:$true] %s880_s13 }
  0x49   : > { %v414_v49 = vsel %vm1759_vm4, 0.0, %v412_v47  ;;  %815 = vmatpush.bf16.msra.mxu0 %v1212_v55  ;;  %v1227_v59 = vld [vmem:[#allocation10 + $0xb0] sm:$0xff]  ;;  %v1226_v62 = vld [vmem:[#allocation10 + $0xa8] sm:$0xff]  ;;  %v1217_v63 = vld [vmem:[#allocation10 + $0x60] sm:$0xff]  ;;  %s1490_s21 = sshra.s32 %s883_s18, 4  ;;  %s1496_s12 = scalar_lea.hbm %s1831_s7, 32  ;;  %s1491_s21 = int_to_ptr.hbm [resolvable:$true] %s1490_s21 }
  0x4a   : > { %v417_v50 = vpack.c.bf16 %v414_v49, %v411_v48  ;;  %v1209_v0 = vld [vmem:[#allocation10 + $0x20] sm:$0xff]  ;;  %v1216_v3 = vld [vmem:[#allocation10 + $0x58] sm:$0xff]  ;;  %v1215_v6 = vld [vmem:[#allocation10 + $0x50] sm:$0xff]  ;;  %s1492_s15 = scalar_lea.hbm %s1491_s21, 16  ;;  %p1497_p11 = scmp.lt.s32.totalorder %s1491_s21, %s1831_s7 }
  0x4b   : > { %540 = vmatpush.bf16.msra.mxu2 %v1197_v28  ;;  %v1225_v2 = vld [vmem:[#allocation10 + $0xa0] sm:$0xff]  ;;  %v1208_v4 = vld [vmem:[#allocation10 + $0x18] sm:$0xff]  ;;  %v1207_v7 = vld [vmem:[#allocation10 + $0x10] sm:$0xff]  ;;  %p1493_p1 = scmp.ne.s32.totalorder %s1491_s21, %s1492_s15  ;;  %p1498_p2 = scmp.lt.s32.totalorder %s1496_s12, %s1492_s15 }
  0x4c   : > { %477 = vmatpush.bf16.msra.mxu3 %v1014_v32  ;;  %490 = vmatpush.bf16.msra.mxu1 %v1026_v38  ;;  %v1224_v5 = vld [vmem:[#allocation10 + $0x98] sm:$0xff]  ;;  %v1223_v8 = vld [vmem:[#allocation10 + $0x90] sm:$0xff]  ;;  %v1214_v9 = vld [vmem:[#allocation10 + $0x48] sm:$0xff] }
  0x4d   : > { %816 = vmatpush.bf16.msra.mxu0 %v1211_v58  ;;  %v1206_v10 = vld [vmem:[#allocation10 + $0x8] sm:$0xff]  ;;  %v1213_v12 = vld [vmem:[#allocation10 + $0x40] sm:$0xff]  ;;  %vm1179_vm6 = vmneg %vm1759_vm4  ;;  %p1494_p4 = pnand %p1493_p1, %p1690_p3  ;;  %p1499_p9 = por %p1498_p2, %p1497_p11 }
  0x4e   : > { %1061 = vmatmul.msk.bf16.vlgmr.msra.gmra.mxu2 %vm466_vm2, %v416_v36  ;;  %v1222_v11 = vld [vmem:[#allocation10 + $0x88] sm:$0xff]  ;;  %v1205_v13 = vld [vmem:[#allocation10] sm:$0xff]  ;;  %vm1176_vm8 = vmpackc.low %vm1560_vm7, %vm1175_vm5 }
  0x4f   : > { %1043 = vmatmul.msk.bf16.vlgmr.msra.gmra.mxu3 %vm466_vm2, %v415_v37  ;;  %843 = vmatpush.bf16.msrb.mxu2 %v1228_v56  ;;  %v1221_v14 = vld [vmem:[#allocation10 + $0x80] sm:$0xff]  ;;  %vm1180_vm9 = vmpackc.low %vm1179_vm6, %vm1560_vm7  ;;  %p1495_p8 = pneg %p1494_p4 }
  0x50   : > { %588 = vmatpush.bf16.msrb.mxu3 %v1204_v35  ;;  %491 = vmatpush.bf16.msra.mxu1 %v1018_v53  ;;  %v1324_v22 = vld [vmem:[%s1829_s5] ss:$0 sm:$0xff] }
  0x51   : > { %817 = vmatpush.bf16.msra.mxu0 %v1210_v61  ;;  %v1325_v47 = vld [vmem:[%s1830_s6] ss:$0 sm:$0xff]  ;;  %p1500_p10 = pnand %p1499_p9, %p1495_p8 }
  0x53   : > { %1044 = vmatmul.msk.bf16.vlgmr.msra.gmra.mxu1 %vm466_vm2, %v415_v37  ;;  %844 = vmatpush.bf16.msrb.mxu2 %v1227_v59 }
  0x54   : > { %589 = vmatpush.bf16.msrb.mxu3 %v1203_v39  ;;  %829 = vmatpush.bf16.msrb.mxu1 %v1220_v54 }
  0x55   : > { %818 = vmatpush.bf16.msra.mxu0 %v1209_v0 }
  0x57   : > { %845 = vmatpush.bf16.msrb.mxu2 %v1226_v62 }
  0x58   : > { %590 = vmatpush.bf16.msrb.mxu3 %v1202_v43  ;;  %830 = vmatpush.bf16.msrb.mxu1 %v1219_v57 }
  0x59   : > { %819 = vmatpush.bf16.msra.mxu0 %v1208_v4 }
  0x5b   : > { %846 = vmatpush.bf16.msrb.mxu2 %v1225_v2 }
  0x5c   : > { %591 = vmatpush.bf16.msrb.mxu3 %v1201_v45  ;;  %831 = vmatpush.bf16.msrb.mxu1 %v1218_v60 }
  0x5d   : > { %820 = vmatpush.bf16.msra.mxu0 %v1207_v7 }
  0x5f   : > { %1078 = vmatmul.msk.bf16.vlgmr.msrb.gmra.mxu3 %vm466_vm2, %v417_v50  ;;  %847 = vmatpush.bf16.msrb.mxu2 %v1224_v5 }
  0x60   : > { %832 = vmatpush.bf16.msrb.mxu1 %v1217_v63 }
  0x61   : > { %821 = vmatpush.bf16.msra.mxu0 %v1206_v10 }
  0x63   : > { %848 = vmatpush.bf16.msrb.mxu2 %v1223_v8 }
  0x64   : > { %833 = vmatpush.bf16.msrb.mxu1 %v1216_v3 }
  0x65   : > { %822 = vmatpush.bf16.msra.mxu0 %v1205_v13 }
  0x67   : > { %849 = vmatpush.bf16.msrb.mxu2 %v1222_v11 }
  0x68   : > { %834 = vmatpush.bf16.msrb.mxu1 %v1215_v6 }
  0x6b   : > { %850 = vmatpush.bf16.msrb.mxu2 %v1221_v14 }
  0x6c   : > { %835 = vmatpush.bf16.msrb.mxu1 %v1214_v9 }
  0x70   : > { %836 = vmatpush.bf16.msrb.mxu1 %v1213_v12 }
  0xd0   : > { %v493_v41 = vpop.f32.mrf.mxu1 }
  0xd1   : > { %v542_v17 = vpop.f32.mrf.mxu2 }
  0xd2   : > { %v479_v15 = vpop.f32.mrf.mxu3 }
  0xd3   : > { %v547_v18 = vadd.f32 %v542_v17, %v479_v15 }
  0xd8   : > { %v495_v42 = vpop.f32.mrf.mxu1 }
  0xd9   : > { %v544_v23 = vpop.f32.mrf.mxu2 }
  0xda   : > { %v481_v16 = vpop.f32.mrf.mxu3 }
  0xdb   : > { %v548_v25 = vadd.f32 %v544_v23, %v481_v16 }
  0xe2   : > { %v593_v19 = vpop.f32.mrf.mxu3 }
  0xe3   : > { %v598_v20 = vadd.f32 %v593_v19, %v547_v18 }
  0xe5   : > { %v604_v24 = vadd.f32 %v1324_v22, %v598_v20 }
  0xe7   : > { %v606_v28 = vmax.f32 %v604_v24, 0.0 }
  0xe9   : > { %v608_v31 = vrot.slane %v606_v28, 7  ;;  %v614_v32 = vrot.slane %v606_v28, 1 }
  0xea   : > { %v595_v26 = vpop.f32.mrf.mxu3 }
  0xeb   : > { %v599_v27 = vadd.f32 %v595_v26, %v548_v25 }
  0xed   : > { %v605_v29 = vadd.f32 %v1324_v22, %v599_v27 }
  0xef   : > { %v607_v30 = vmax.f32 %v605_v29, 0.0 }
  0xf1   : > { %v609_v33 = vrot.slane %v607_v30, 7  ;;  %v615_v34 = vrot.slane %v607_v30, 1  ;;  %v621_v35 = vpack.c.bf16 %v607_v30, %v606_v28 }
  0xf3   : > { %837 = vmatmul.bf16.vlgmr.msrb.gmra.mxu1 %v621_v35  ;;  %v610_v36 = vsel %vm401_vm0, %v608_v31, %v609_v33  ;;  %v611_v37 = vsel %vm401_vm0, %v609_v33, %v608_v31  ;;  %v616_v21 = vsel %vm410_vm3, %v614_v32, %v615_v34  ;;  %v617_v38 = vsel %vm410_vm3, %v615_v34, %v614_v32 }
  0xf4   : > { %v1177_v39 = vpack.c.bf16 %v610_v36, %v611_v37  ;;  %v1181_v40 = vpack.c.bf16 %v617_v38, %v616_v21 }
  0xf6   : > { %1178 = vmatmul.msk.bf16.vlgmr.msra.gmra.mxu0 %vm1176_vm8, %v1177_v39  ;;  %1182 = vmatmul.msk.bf16.vlgmr.msrb.gmra.mxu2 %vm1180_vm9, %v1181_v40 }
 0x170   : > { %v838_v45 = vpop.f32.mrf.mxu1 }
 0x173   : > { %v824_v43 = vpop.f32.mrf.mxu0 }
 0x174   : > { %v825_v44 = vadd.f32 %v824_v43, %v493_v41 }
 0x176   : > { %v839_v46 = vadd.f32 %v838_v45, %v825_v44 }
 0x178   : > { %v840_v53 = vpop.f32.mrf.mxu1 }
 0x179   : > { %v852_v48 = vpop.f32.mrf.mxu2 }
 0x17a   : > { %v853_v1 = vadd.f32 %v852_v48, %v839_v46 }
 0x17b   : > { %v826_v49 = vpop.f32.mrf.mxu0 }
 0x17c   : > { %v861_v50 = vadd.f32 %v1325_v47, %v853_v1  ;;  %v827_v51 = vadd.f32 %v826_v49, %v495_v42 }
 0x17e   : > { %v863_v52 = vmax.f32 %v861_v50, 0.0  ;;  %v841_v54 = vadd.f32 %v840_v53, %v827_v51 }
 0x180   : > { %865 = vst [vmem:[%s364_s16] sm:$0xff] %v863_v52 }
 0x181   : > { %v854_v55 = vpop.f32.mrf.mxu2 }
 0x182   : > { %v855_v56 = vadd.f32 %v854_v55, %v841_v54 }
 0x184   : > { %v862_v57 = vadd.f32 %v1325_v47, %v855_v56 }
 0x186   : > { %v864_v58 = vmax.f32 %v862_v57, 0.0 }
 0x188   : > { %866 = vst [vmem:[%s364_s16 + $0x8] sm:$0xff] %v864_v58 }
 0x189   : > { %1503 = shalt.err (!%p1500_p10)
}
 0x18a   : > { %s1561_s19 = smov 128   ;;  %s1562_s10 = smov 8  }
 0x18b   : > { %1248 = dma.vmem_to_hbm [thread:$0]  (%p1690_p3), %s881_s13, 256, %s883_s18, %s868_s28, %s1561_s19, %s1561_s19, %s1562_s10  }
 0x18c PF: > { %s897_s29 = sand.u32 1, %s1538_s24   ;;  %p1848_p12 = scmp.ge.s32.totalorder %s1550_s27, 2 }
 0x18d   : > { %s898_s20 = scalar_lea.sflag [#allocation4], %s897_s29 }
 0x18e   : > { %p1268_p13 = pnand %p1848_p12, %p1638_p6 }
 0x190   : > { %p1269_p0 = pneg %p1268_p13 }
 0x192   : > { %1533 = dma.done.wait (%p1269_p0), %s898_s20, 256  }
 0x193   : > { %1535 = vsyncadd (%p1269_p0), %s898_s20, 4294967040  ;;  %p22_p5 = scmp.ge.s32.totalorder %s1680_s23, 4   ;;  %s1849_s24 = smov %s1542_s25 }
 0x194   : > { %s1850_s25 = smov %s1546_s26  ;;  %s1851_s26 = smov %s1696_s9 }
 0x195   : > { %s1852_s27 = smov %s1680_s23  ;;  %24 = sbr.rel (!%p22_p5) target bundleno = 9 (0x9), region = 109 }
 0x19a   :  { %904 = vsyncpa [#allocation3], 1 }
 0x19b   :  { %906 = vsyncpa [#allocation3 + $0x1], 1 }
 0x19c   :  { %907 = vsyncpa [#allocation6], 1 }
 0x19d   :  { %908 = vsyncpa [#allocation9], 1 }
 0x19e   :  { %909 = vsyncpa [#allocation4], 1 }
 0x19f   :  { %911 = vsyncpa [#allocation4 + $0x1], 1 }

</bundles_post_ra>
